<compile_context>
chip_gen: v7x
topology: tpu7x:2x2x1
jax: 0.10.0
libtpu: 0.0.40
codegen_flags: <defaults>
</compile_context>

<pallas_src>
import math

import jax
import jax.numpy as jnp
from jax.experimental import pallas as pl
from jax.experimental.pallas import tpu as pltpu


def _round_up(x, m):
    return ((x + m - 1) // m) * m


def _num_tensorcores_per_chip():
    """Best-effort TensorCores per chip (2 on v7x, 1 on v5e/v6e)."""
    try:
        info = pltpu.get_tpu_info()
        for attr in ("num_tensorcores", "tensorcore_count", "num_cores",
                     "cores_per_chip", "core_count"):
            v = getattr(info, attr, None)
            if isinstance(v, int) and 1 <= v <= 8:
                return v
    except Exception:
        pass
    try:
        if "v7" in jax.devices()[0].device_kind.lower():
            return 2
    except Exception:
        pass
    return 1


def _choose_pack(M, K, n_out):
    """Smallest row-packing factor that makes the output (and, if cheap, the
    input) lane-dense (multiple of 128) via a block-diagonal weight."""
    if n_out % 128 == 0:
        return 1
    candidates = [p for p in (2, 4, 8)
                  if M % p == 0
                  and (p * n_out) % 128 == 0
                  and (p * K) * (p * n_out) * 4 <= (2 << 20)]  # keep weight tiny
    if not candidates:
        return 1
    for p in candidates:
        if (p * K) % 128 == 0:
            return p            # both x reads and output writes lane-dense
    return candidates[0]        # at least the output writes lane-dense


def _modified_sigmoid_stable(y, log_exponent, max_value, threshold):
    # max_value * sigmoid(y)**exp(log_exponent') + threshold, EUP-friendly:
    # stable log_sigmoid(y) = min(y, 0) - log1p(exp(-|y|))  (no 0**c corner).
    log_sig = jnp.minimum(y, 0.0) - jnp.log1p(jnp.exp(-jnp.abs(y)))
    return max_value * jnp.exp(log_exponent * log_sig) + threshold


def _make_noise_head_kernel(log_exponent, max_value, threshold):
    def kernel(x_ref, w_ref, b_ref, o_ref):
        # x_ref: (TMp, Kp)  w_ref: (Kp, Np)  b_ref: (1, Np)  o_ref: (TMp, Np)
        y = jnp.dot(x_ref[...], w_ref[...], preferred_element_type=jnp.float32)
        y = y + b_ref[...].astype(jnp.float32)
        out = _modified_sigmoid_stable(y, log_exponent, max_value, threshold)
        o_ref[...] = out.astype(o_ref.dtype)
    return kernel


def _row_spec(shape, buffered):
    if buffered is not None:
        try:
            return pl.BlockSpec(shape, lambda i: (i, 0),
                                pipeline_mode=pl.Buffered(buffered))
        except Exception:
            pass
    return pl.BlockSpec(shape, lambda i: (i, 0))


def noise_head(x, weight, bias, *, exponent=10.0, max_value=2.0, threshold=1e-7,
               tile_m=4096, small_m_fallback=True, min_pallas_rows=512):
    """x: (..., in_size); weight: (noise_filter_bank, in_size); bias: (noise_filter_bank,)."""
    orig_shape = x.shape
    in_size = orig_shape[-1]
    n_out = weight.shape[0]
    log_exponent = math.log(exponent)

    x2d = x.reshape(-1, in_size)
    M = x2d.shape[0]

    # Small-M fallback: fixed pallas_call overhead dwarfs sub-us of real work.
    if small_m_fallback and M < min_pallas_rows:
        y = (x2d.astype(jnp.float32) @ weight.T.astype(jnp.float32)
             + bias.astype(jnp.float32))
        out2d = _modified_sigmoid_stable(y, log_exponent, max_value,
                                         threshold).astype(x.dtype)
        return out2d.reshape(*orig_shape[:-1], n_out)

    # Lane-dense packing of rows (free, bit-identical row-major reshapes on host
    # + block-diagonal weight).
    pack = _choose_pack(M, in_size, n_out)
    Mp, Kp, Np = M // pack, pack * in_size, pack * n_out

    w_t = weight.T.astype(x.dtype)                 # one-time host transpose (K, N)
    if pack > 1:
        w_in = jnp.kron(jnp.eye(pack, dtype=x.dtype), w_t)          # (Kp, Np)
        b_in = jnp.tile(bias.astype(x.dtype), pack).reshape(1, Np)
        x_in = x2d.reshape(Mp, Kp)                                   # free view
    else:
        w_in = w_t
        b_in = bias.astype(x.dtype).reshape(1, Np)
        x_in = x2d

    # Row tile (in packed rows): big tiles, multiple of 8 when partial.
    tm_p = max(1, min(tile_m // pack, Mp))
    if tm_p < Mp:
        tm_p = min(_round_up(tm_p, 8), Mp)

    # Give every TensorCore work on multi-TC chips (v7x); skip on v5e/v6e.
    n_tc = _num_tensorcores_per_chip()
    if n_tc >= 2 and Mp >= 8 * n_tc and pl.cdiv(Mp, tm_p) < n_tc:
        tm_p = min(_round_up(pl.cdiv(Mp, n_tc), 8), Mp)

    grid_m = pl.cdiv(Mp, tm_p)
    buffered = 3 if grid_m >= 3 else None          # deeper pipeline only if useful

    kernel = _make_noise_head_kernel(log_exponent, max_value, threshold)

    out = pl.pallas_call(
        kernel,
        out_shape=jax.ShapeDtypeStruct((Mp, Np), x.dtype),
        grid_spec=pl.GridSpec(
            grid=(grid_m,),
            in_specs=[
                _row_spec((tm_p, Kp), buffered),
                pl.BlockSpec((Kp, Np), lambda i: (0, 0)),   # grid-invariant, VMEM resident
                pl.BlockSpec((1, Np), lambda i: (0, 0)),
            ],
            out_specs=_row_spec((tm_p, Np), buffered),
        ),
        compiler_params=pltpu.CompilerParams(
            dimension_semantics=("parallel",),
        ),
    )(x_in, w_in, b_in)

    return out.reshape(M, n_out).reshape(*orig_shape[:-1], n_out)


def modified_sigmoid_ref(x, exponent=10.0, max_value=2.0, threshold=1e-7):
    return max_value * jax.nn.sigmoid(x) ** math.log(exponent) + threshold


if __name__ == "__main__":
    key = jax.random.PRNGKey(0)
    in_size, noise_filter_bank = 32, 64
    k1, k2, k3, k4 = jax.random.split(key, 4)

    bound = 1.0 / math.sqrt(in_size)
    weight = jax.random.uniform(
        k2, (noise_filter_bank, in_size), minval=-bound, maxval=bound, dtype=jnp.float32
    )
    bias = jax.random.uniform(
        k3, (noise_filter_bank,), minval=-bound, maxval=bound, dtype=jnp.float32
    )

    # Small shape matching the module's usage; force the Pallas path.
    x_small = jax.random.normal(k1, (2, 8, in_size), dtype=jnp.float32)
    out_small = jax.block_until_ready(
        noise_head(x_small, weight, bias, small_m_fallback=False)
    )
    ref_small = modified_sigmoid_ref(x_small @ weight.T + bias)
    assert out_small.shape == (2, 8, noise_filter_bank), out_small.shape
    assert jnp.allclose(out_small, ref_small, atol=1e-5, rtol=1e-5), \
        float(jnp.max(jnp.abs(out_small - ref_small)))

    # Larger shape exercising the tiled / multi-step path (defaults).
    x_big = jax.random.normal(k4, (4, 512, in_size), dtype=jnp.float32)
    out_big = jax.block_until_ready(noise_head(x_big, weight, bias))
    ref_big = modified_sigmoid_ref(x_big @ weight.T + bias)
    assert out_big.shape == (4, 512, noise_filter_bank), out_big.shape
    assert jnp.allclose(out_big, ref_big, atol=1e-5, rtol=1e-5), \
        float(jnp.max(jnp.abs(out_big - ref_big)))

    print("KERNEL_OK")
</pallas_src>

<mosaic_0001>
module attributes {stable_mosaic.version = 11 : i64} {
  func.func @kernel(%arg0: i32, %arg1: memref<4x128xf32, #tpu.memory_space<vmem>>, %arg2: memref<128x256xf32, #tpu.memory_space<vmem>>, %arg3: memref<1x256xf32, #tpu.memory_space<vmem>>, %arg4: memref<4x256xf32, #tpu.memory_space<vmem>>) attributes {dimension_semantics = [#tpu.dimension_semantics<parallel>], iteration_bounds = array<i64: 1>, scalar_prefetch = 0 : i64, scratch_operands = 0 : i64, tpu.core_type = #tpu.core_type<tc>, window_params = [{transform_indices = @transform_0, window_bounds = array<i64: 4, 128>}, {pipeline_mode = #tpu.pipeline_mode<synchronous>, transform_indices = @transform_1, window_bounds = array<i64: 128, 256>}, {pipeline_mode = #tpu.pipeline_mode<synchronous>, transform_indices = @transform_2, window_bounds = array<i64: 1, 256>}, {transform_indices = @transform_3, window_bounds = array<i64: 4, 256>}]} {
    %c0 = arith.constant 0 : index
    %c0_0 = arith.constant 0 : index
    %0 = vector.load %arg1[%c0, %c0_0] : memref<4x128xf32, #tpu.memory_space<vmem>>, vector<4x128xf32>
    %c0_1 = arith.constant 0 : index
    %c0_2 = arith.constant 0 : index
    %1 = vector.load %arg2[%c0_1, %c0_2] : memref<128x256xf32, #tpu.memory_space<vmem>>, vector<128x256xf32>
    %cst = arith.constant dense<0.000000e+00> : vector<4x256xf32>
    %2 = tpu.matmul %0, %1, %cst {dimension_numbers = #tpu.dot_dimension_numbers<[1], [0], [0], [1], [0, 0, 1, 1], [], []>} : vector<4x128xf32>, vector<128x256xf32>, vector<4x256xf32> -> vector<4x256xf32>
    %c0_3 = arith.constant 0 : index
    %c0_4 = arith.constant 0 : index
    %3 = vector.load %arg3[%c0_3, %c0_4] : memref<1x256xf32, #tpu.memory_space<vmem>>, vector<1x256xf32>
    %4 = vector.broadcast %3 : vector<1x256xf32> to vector<4x256xf32>
    %5 = arith.addf %2, %4 : vector<4x256xf32>
    %cst_5 = arith.constant 0.000000e+00 : f32
    %6 = vector.broadcast %cst_5 : f32 to vector<4x256xf32>
    %7 = arith.minimumf %5, %6 : vector<4x256xf32>
    %8 = math.absf %5 : vector<4x256xf32>
    %cst_6 = arith.constant 0.000000e+00 : f32
    %9 = vector.broadcast %cst_6 : f32 to vector<4x256xf32>
    %10 = arith.subf %9, %8 : vector<4x256xf32>
    %11 = math.exp %10 : vector<4x256xf32>
    %12 = math.log1p %11 : vector<4x256xf32>
    %13 = arith.subf %7, %12 : vector<4x256xf32>
    %cst_7 = arith.constant 2.30258512 : f32
    %14 = vector.broadcast %cst_7 : f32 to vector<4x256xf32>
    %15 = arith.mulf %14, %13 : vector<4x256xf32>
    %16 = math.exp %15 : vector<4x256xf32>
    %cst_8 = arith.constant 2.000000e+00 : f32
    %17 = vector.broadcast %cst_8 : f32 to vector<4x256xf32>
    %18 = arith.mulf %17, %16 : vector<4x256xf32>
    %cst_9 = arith.constant 1.000000e-07 : f32
    %19 = vector.broadcast %cst_9 : f32 to vector<4x256xf32>
    %20 = arith.addf %18, %19 : vector<4x256xf32>
    %c0_10 = arith.constant 0 : index
    %c0_11 = arith.constant 0 : index
    %21 = vector.load %arg4[%c0_10, %c0_11] : memref<4x256xf32, #tpu.memory_space<vmem>>, vector<4x256xf32>
    tpu.vector_store %arg4[%c0_10, %c0_11], %20 {strides = array<i32>} : memref<4x256xf32, #tpu.memory_space<vmem>>, vector<4x256xf32>,
    return
  }
  func.func @transform_0(%arg0: i32) -> (i32, i32) {
    %c0_i32 = arith.constant 0 : i32
    %c0_i32_0 = arith.constant 0 : i32
    return %arg0, %c0_i32 : i32, i32
  }
  func.func @transform_1(%arg0: i32) -> (i32, i32) {
    %c0_i32 = arith.constant 0 : i32
    %c0_i32_0 = arith.constant 0 : i32
    %c0_i32_1 = arith.constant 0 : i32
    return %c0_i32, %c0_i32_0 : i32, i32
  }
  func.func @transform_2(%arg0: i32) -> (i32, i32) {
    %c0_i32 = arith.constant 0 : i32
    %c0_i32_0 = arith.constant 0 : i32
    %c0_i32_1 = arith.constant 0 : i32
    return %c0_i32, %c0_i32_0 : i32, i32
  }
  func.func @transform_3(%arg0: i32) -> (i32, i32) {
    %c0_i32 = arith.constant 0 : i32
    %c0_i32_0 = arith.constant 0 : i32
    return %arg0, %c0_i32 : i32, i32
  }
}

</mosaic_0001>

<bundles_post_ra>
// kernel: tpu_custom_call.1
= control target key start
LH: loop header
LB: loop body
LE: loop exit
PB: predicated region body
PF: predicated region fallthrough
CT: control target
= control target key end

     0   :  { %8 = vsyncpa [#allocation3], 0  ;;  %s412_s0 = inlined_call_operand.hbm [shape: f32[4,128], index: 0, kind: input, shape index: {}]   ;;  %s413_s1 = inlined_call_operand.hbm [shape: f32[128,256], index: 1, kind: input, shape index: {}]   ;;  %s414_s2 = inlined_call_operand.vmem [shape: f32[1,256], index: 2, kind: input, shape index: {}]   ;;  %s415_s3 = inlined_call_operand.hbm [shape: f32[4,256], index: 3, kind: output, shape index: {}]  }
   0x1   :  { %9 = vsyncpa [#allocation6], 0 }
   0x2   :  { %10 = vsyncpa [#allocation4], 0  ;;  %s340_s12 = smov [#allocation2]   ;;  %s341_s14 = smov [#allocation5]  }
   0x3   :  { %s17_s13 = sshll.u32 %s340_s12, 4  ;;  %s26_s15 = sshll.u32 %s341_s14, 4  ;;  %s18_s13 = int_to_ptr.vmem [resolvable:$true] %s17_s13  ;;  %s366_s15 = int_to_ptr.vmem [resolvable:$true] %s26_s15 }
   0x4   :  { %s268_s18 = scalar_lea.hbm %s412_s0, 64 }
   0x5   :  { %p269_p0 = scmp.ne.s32.totalorder %s412_s0, %s268_s18  ;;  %p272_p1 = scmp.lt.u32.totalorder %s268_s18, %s412_s0 }
   0x7   :  { %p274_p2 = pnand %p272_p1, %p269_p0 }
   0x9   :  { %277 = shalt.err (!%p274_p2)
}
   0xa   :  { %s278_s23 = scalar_lea.vmem %s18_s13, 64  ;;  %p283_p4 = scmp.lt.s32.totalorder %s18_s13, %s18_s13 }
   0xb   :  { %p279_p3 = scmp.ne.s32.totalorder %s18_s13, %s278_s23  ;;  %p284_p5 = scmp.lt.s32.totalorder %s278_s23, %s278_s23 }
   0xd   :  { %p285_p6 = por %p284_p5, %p283_p4 }
   0xf   :  { %p286_p7 = pnand %p285_p6, %p279_p3 }
  0x11   :  { %289 = shalt.err (!%p286_p7)
}
  0x12   :  { %20 = dma.hbm_to_vmem [thread:$0]  %s412_s0, 64, %s18_s13, [#allocation3]  }
  0x13   :  { %s290_s28 = scalar_lea.hbm %s413_s1, 4096 }
  0x14   :  { %p291_p8 = scmp.ne.s32.totalorder %s413_s1, %s290_s28  ;;  %p294_p9 = scmp.lt.u32.totalorder %s290_s28, %s413_s1 }
  0x16   :  { %p296_p10 = pnand %p294_p9, %p291_p8 }
  0x18   :  { %299 = shalt.err (!%p296_p10)
}
  0x19   :  { %s300_s6 = scalar_lea.vmem %s366_s15, 4096  ;;  %p305_p12 = scmp.lt.s32.totalorder %s366_s15, %s366_s15 }
  0x1a   :  { %p301_p11 = scmp.ne.s32.totalorder %s366_s15, %s300_s6  ;;  %p306_p13 = scmp.lt.s32.totalorder %s300_s6, %s300_s6 }
  0x1c   :  { %p307_p0 = por %p306_p13, %p305_p12 }
  0x1e   :  { %p308_p1 = pnand %p307_p0, %p301_p11 }
  0x20   :  { %311 = shalt.err (!%p308_p1)
}
  0x21   :  { %s342_s0 = smov 256   ;;  %s343_s7 = smov 16  }
  0x22   :  { %32 = dma.hbm_to_vmem [thread:$0]  %s413_s1, 4096, %s366_s15, [#allocation6], %s342_s0, %s342_s0, %s343_s7  }
  0x23   :  { %334 = dma.done.wait [#allocation3], 64  }
  0x24   :  { %335 = vsyncadd [#allocation3], 4294967232 }
  0x25   :  { %336 = dma.done.wait [#allocation6], 4096  }
  0x26   :  { %337 = vsyncadd [#allocation6], 4294963200  ;;  %v344_v0 = vmov 0.0   ;;  %v43_v1 = vld [vmem:[#allocation5 + $0x8] sm:$0xff]  ;;  %v45_v2 = vld [vmem:[#allocation5 + $0x18] sm:$0xff]  ;;  %v76_v50 = vlaneseq }
  0x27   :  { %150 = vmatprep.mubr.f32.mxu0 %v344_v0  ;;  %v42_v3 = vld [vmem:[#allocation5] sm:$0xff]  ;;  %v218_v4 = vpack.c.bf16 %v45_v2, %v43_v1  ;;  %v44_v5 = vld [vmem:[#allocation5 + $0x10] sm:$0xff]  ;;  %v47_v6 = vld [vmem:[#allocation5 + $0x28] sm:$0xff] }
  0x28   :  { %v49_v7 = vld [vmem:[#allocation5 + $0x38] sm:$0xff]  ;;  %v220_v8 = vpack.c.bf16 %v44_v5, %v42_v3  ;;  %v46_v10 = vld [vmem:[#allocation5 + $0x20] sm:$0xff]  ;;  %v48_v11 = vld [vmem:[#allocation5 + $0x30] sm:$0xff]  ;;  %v77_v51 = vshrl.u32 %v76_v50, 7 }
  0x29   :  { %v222_v9 = vpack.c.bf16 %v49_v7, %v47_v6  ;;  %v51_v12 = vld [vmem:[#allocation5 + $0x48] sm:$0xff]  ;;  %219 = vmatprep.subr.bf16.mxu0 %v218_v4  ;;  %v53_v13 = vld [vmem:[#allocation5 + $0x58] sm:$0xff]  ;;  %v224_v14 = vpack.c.bf16 %v48_v11, %v46_v10  ;;  %v50_v16 = vld [vmem:[#allocation5 + $0x40] sm:$0xff] }
  0x2a   :  { %221 = vmatpush1.bf16.msra.mxu0 %v220_v8  ;;  %v226_v15 = vpack.c.bf16 %v53_v13, %v51_v12  ;;  %v52_v17 = vld [vmem:[#allocation5 + $0x50] sm:$0xff]  ;;  %v55_v18 = vld [vmem:[#allocation5 + $0x68] sm:$0xff]  ;;  %v57_v19 = vld [vmem:[#allocation5 + $0x78] sm:$0xff]  ;;  %v78_v52 = vsub.s32 0, %v77_v51  ;;  %v82_v54 = vsub.s32 1, %v77_v51 }
  0x2b   :  { %223 = vmatprep.subr.bf16.mxu0 %v222_v9  ;;  %v228_v20 = vpack.c.bf16 %v52_v17, %v50_v16  ;;  %v230_v21 = vpack.c.bf16 %v57_v19, %v55_v18  ;;  %v54_v22 = vld [vmem:[#allocation5 + $0x60] sm:$0xff]  ;;  %v56_v23 = vld [vmem:[#allocation5 + $0x70] sm:$0xff]  ;;  %v59_v24 = vld [vmem:[#allocation5 + $0x88] sm:$0xff] }
  0x2c   :  { %v61_v25 = vld [vmem:[#allocation5 + $0x98] sm:$0xff]  ;;  %v232_v26 = vpack.c.bf16 %v56_v23, %v54_v22  ;;  %v58_v28 = vld [vmem:[#allocation5 + $0x80] sm:$0xff]  ;;  %v60_v29 = vld [vmem:[#allocation5 + $0x90] sm:$0xff] }
  0x2d   :  { %v234_v27 = vpack.c.bf16 %v61_v25, %v59_v24  ;;  %v63_v30 = vld [vmem:[#allocation5 + $0xa8] sm:$0xff]  ;;  %v65_v31 = vld [vmem:[#allocation5 + $0xb8] sm:$0xff]  ;;  %v236_v32 = vpack.c.bf16 %v60_v29, %v58_v28  ;;  %v62_v34 = vld [vmem:[#allocation5 + $0xa0] sm:$0xff] }
  0x2e   :  { %225 = vmatpush1.bf16.msra.mxu0 %v224_v14  ;;  %v238_v33 = vpack.c.bf16 %v65_v31, %v63_v30  ;;  %v64_v35 = vld [vmem:[#allocation5 + $0xb0] sm:$0xff]  ;;  %v67_v36 = vld [vmem:[#allocation5 + $0xc8] sm:$0xff]  ;;  %v69_v37 = vld [vmem:[#allocation5 + $0xd8] sm:$0xff] }
  0x2f   :  { %227 = vmatprep.subr.bf16.mxu0 %v226_v15  ;;  %v240_v38 = vpack.c.bf16 %v64_v35, %v62_v34  ;;  %v242_v39 = vpack.c.bf16 %v69_v37, %v67_v36  ;;  %v66_v40 = vld [vmem:[#allocation5 + $0xc0] sm:$0xff]  ;;  %v68_v41 = vld [vmem:[#allocation5 + $0xd0] sm:$0xff]  ;;  %v71_v42 = vld [vmem:[#allocation5 + $0xe8] sm:$0xff] }
  0x30   :  { %v73_v43 = vld [vmem:[#allocation5 + $0xf8] sm:$0xff]  ;;  %v244_v44 = vpack.c.bf16 %v68_v41, %v66_v40  ;;  %v70_v46 = vld [vmem:[#allocation5 + $0xe0] sm:$0xff]  ;;  %v72_v47 = vld [vmem:[#allocation5 + $0xf0] sm:$0xff] }
  0x31   :  { %v246_v45 = vpack.c.bf16 %v73_v43, %v71_v42  ;;  %v248_v48 = vpack.c.bf16 %v72_v47, %v70_v46  ;;  %v41_v49 = vld [vmem:[#allocation2] sm:$0xf] }
  0x32   :  { %229 = vmatpush1.bf16.msra.mxu0 %v228_v20  ;;  %v74_v53 = vld [vmem:[%s414_s2] sm:$0x3]  ;;  %s345_s2 = smov [#allocation7]  }
  0x33   :  { %231 = vmatprep.subr.bf16.mxu0 %v230_v21  ;;  %v79_v55 = vrot.slane %v74_v53, %v78_v52  ;;  %v83_v56 = vrot.slane %v74_v53, %v82_v54  ;;  %s208_s11 = sshll.u32 %s345_s2, 4  ;;  %s209_s11 = int_to_ptr.vmem [resolvable:$true] %s208_s11 }
  0x34   :  { %s312_s12 = scalar_lea.vmem %s209_s11, 128  ;;  %p317_p3 = scmp.lt.s32.totalorder %s209_s11, %s209_s11 }
  0x35   :  { %p313_p2 = scmp.ne.s32.totalorder %s209_s11, %s312_s12  ;;  %p318_p4 = scmp.lt.s32.totalorder %s312_s12, %s312_s12 }
  0x36   :  { %233 = vmatpush1.bf16.msra.mxu0 %v232_v26 }
  0x37   :  { %235 = vmatprep.subr.bf16.mxu0 %v234_v27  ;;  %p319_p5 = por %p318_p4, %p317_p3 }
  0x39   :  { %p320_p6 = pnand %p319_p5, %p313_p2 }
  0x3a   :  { %237 = vmatpush1.bf16.msra.mxu0 %v236_v32 }
  0x3b   :  { %239 = vmatprep.subr.bf16.mxu0 %v238_v33 }
  0x3e   :  { %241 = vmatpush1.bf16.msra.mxu0 %v240_v38 }
  0x3f   :  { %243 = vmatprep.subr.bf16.mxu0 %v242_v39 }
  0x42   :  { %245 = vmatpush1.bf16.msra.mxu0 %v244_v44 }
  0x43   :  { %247 = vmatprep.subr.bf16.mxu0 %v246_v45 }
  0x46   :  { %249 = vmatpush1.bf16.msra.mxu0 %v248_v48 }
  0x49   :  { %151 = vmatmul.mubr.f32.vlgmr.msra.gmra.mrb[0].mxu0 %v41_v49 }
 0x11c   :  { %v152_v57 = vpop.f32.mrb[0].mxu0 }
 0x11d   :  { %v153_v58 = vadd.f32 %v152_v57, %v79_v55  ;;  %v154_v59 = vpop.f32.mrb[1].mxu0 }
 0x11e   :  { %v155_v60 = vadd.f32 %v154_v59, %v83_v56 }
 0x11f   :  { %v159_v61 = vand.u32 2147483647, %v153_v58  ;;  %v157_v17 = vmin.f32 %v153_v58, 0.0 }
 0x120   :  { %v160_v62 = vand.u32 2147483647, %v155_v60  ;;  %v158_v21 = vmin.f32 %v155_v60, 0.0 }
 0x121   :  { %v161_v63 = vsub.f32 0.0, %v159_v61 }
 0x122   :  { %v162_v0 = vsub.f32 0.0, %v160_v62 }
 0x123   :  { %v163_v1 = vmul.f32 1.442695, %v161_v63 }
 0x124   :  { %v165_v2 = vmul.f32 1.442695, %v162_v0 }
 0x125   :  { %256 = vpow2.f32 %v163_v1 }
 0x126   :  { %258 = vpow2.f32 %v165_v2 }
 0x12f   :  { %v257_v3 = vpop.eup %256 }
 0x130   :  { %v259_v4 = vpop.eup %258  ;;  %v167_v5 = vadd.f32 1.0, %v257_v3  ;;  %v170_v7 = vmul.f32 -0.5, %v257_v3  ;;  %v173_v10 = vand.u32 2147483647, %v257_v3 }
 0x131   :  { %v176_v6 = vadd.f32 1.0, %v259_v4  ;;  %v179_v8 = vmul.f32 -0.5, %v259_v4  ;;  %v182_v12 = vand.u32 2147483647, %v259_v4 }
 0x132   :  { %260 = vlog2.f32 %v167_v5  ;;  %v171_v9 = vadd.f32 1.0, %v170_v7  ;;  %vm174_vm0 = vcmp.lt.f32.partialorder %v173_v10, 0.0004427343 }
 0x133   :  { %262 = vlog2.f32 %v176_v6  ;;  %v180_v11 = vadd.f32 1.0, %v179_v8  ;;  %vm183_vm1 = vcmp.lt.f32.partialorder %v182_v12, 0.0004427343 }
 0x134   :  { %v172_v16 = vmul.f32 %v257_v3, %v171_v9 }
 0x135   :  { %v181_v19 = vmul.f32 %v259_v4, %v180_v11 }
 0x13c   :  { %v261_v13 = vpop.eup %260 }
 0x13d   :  { %v263_v14 = vpop.eup %262  ;;  %v169_v15 = vmul.f32 0.6931472, %v261_v13 }
 0x13e   :  { %v178_v18 = vmul.f32 0.6931472, %v263_v14 }
 0x13f   :  { %v175_v20 = vsel %vm174_vm0, %v172_v16, %v169_v15 }
 0x140   :  { %v185_v22 = vsub.f32 %v157_v17, %v175_v20  ;;  %v184_v23 = vsel %vm183_vm1, %v181_v19, %v178_v18 }
 0x141   :  { %v186_v24 = vsub.f32 %v158_v21, %v184_v23 }
 0x142   :  { %v187_v25 = vmul.f32 2.3025851, %v185_v22 }
 0x143   :  { %v188_v26 = vmul.f32 2.3025851, %v186_v24 }
 0x144   :  { %v189_v27 = vmul.f32 1.442695, %v187_v25 }
 0x145   :  { %v191_v28 = vmul.f32 1.442695, %v188_v26 }
 0x146   :  { %264 = vpow2.f32 %v189_v27 }
 0x147   :  { %266 = vpow2.f32 %v191_v28 }
 0x150   :  { %v265_v29 = vpop.eup %264 }
 0x151   :  { %v267_v30 = vpop.eup %266  ;;  %v193_v31 = vmul.f32 2.0, %v265_v29 }
 0x152   :  { %v194_v32 = vmul.f32 2.0, %v267_v30 }
 0x153   :  { %v195_v33 = vadd.f32 1e-07, %v193_v31 }
 0x154   :  { %v196_v34 = vadd.f32 1e-07, %v194_v32 }
 0x156   :  { %v199_v35 = vcombine.low %v195_v33, %v196_v34 }
 0x158   :  { %201 = vst [vmem:[#allocation7] sm:$0xff] %v199_v35 }
 0x159   :  { %323 = shalt.err (!%p320_p6)
}
 0x15a   :  { %s324_s15 = scalar_lea.hbm %s415_s3, 128 }
 0x15b   :  { %p325_p7 = scmp.ne.s32.totalorder %s415_s3, %s324_s15  ;;  %p328_p8 = scmp.lt.u32.totalorder %s324_s15, %s415_s3 }
 0x15d   :  { %p330_p9 = pnand %p328_p8, %p325_p7 }
 0x15f   :  { %333 = shalt.err (!%p330_p9)
}
 0x160   :  { %211 = dma.vmem_to_hbm [thread:$0]  %s209_s11, 128, %s415_s3, [#allocation4]  }
 0x161   :  { %338 = dma.done.wait [#allocation4], 128  }
 0x162   :  { %339 = vsyncadd [#allocation4], 4294967168 }
 0x163   :  { %215 = vsyncpa [#allocation3], 1 }
 0x164   :  { %216 = vsyncpa [#allocation6], 1 }
 0x165   :  { %217 = vsyncpa [#allocation4], 1 }

</bundles_post_ra>
